<compile_context>
chip_gen: v6e
topology: v6e:2x2x1
jax: 0.10.0
libtpu: 0.0.40
codegen_flags: <defaults>
</compile_context>

<pallas_src>
import functools

import jax
import jax.numpy as jnp
from jax.experimental import pallas as pl
from jax.experimental.pallas import tpu as pltpu

_LANE = 128                       # lane-dense last dim
_TARGET_BLOCK_BYTES = 2 * 1024 * 1024   # ~2 MiB per block (in); 4x = 8 MiB VMEM


def _round_up(v, m):
    return ((v + m - 1) // m) * m


def _bf16_compute_ok():
    """bf16 VPU/EUP exist on v6e/v7x; keep f32 compute elsewhere (v5e etc.)."""
    try:
        kind = jax.devices()[0].device_kind.lower()
    except Exception:
        return False
    return ("v6" in kind) or ("v7" in kind)


# ---------------------------------------------------------------------------
# Kernels (alpha specialized at trace time; one transcendental per element).
# Transcendental runs in `compute_dtype`; the cheap affine combine stays f32.
# ---------------------------------------------------------------------------
def _soft_exp_pos_kernel(x_ref, o_ref, *, alpha, inv_alpha, compute_dtype):
    """alpha > 0 : (exp(alpha*x) - 1) * (1/alpha) + alpha."""
    x = x_ref[...].astype(compute_dtype)
    e = jnp.exp(x * alpha).astype(jnp.float32)
    o_ref[...] = ((e - 1.0) * inv_alpha + alpha).astype(o_ref.dtype)


def _soft_exp_neg_kernel(x_ref, o_ref, *, alpha, inv_alpha, compute_dtype):
    """alpha < 0 : -log(1 - alpha*(x + alpha)) * (1/alpha)."""
    x = x_ref[...].astype(compute_dtype)
    lg = jnp.log(1.0 - (x + alpha) * alpha).astype(jnp.float32)
    o_ref[...] = (-lg * inv_alpha).astype(o_ref.dtype)


def _soft_exp_jnp(x, alpha):
    """Plain-jnp path for tiny tails (< 128 elements)."""
    xf = x.astype(jnp.float32)
    if alpha < 0.0:
        y = -jnp.log(1.0 - alpha * (xf + alpha)) / alpha
    else:
        y = (jnp.exp(alpha * xf) - 1.0) / alpha + alpha
    return y.astype(x.dtype)


# ---------------------------------------------------------------------------
# Wrapper
# ---------------------------------------------------------------------------
def soft_exponential(x, alpha):
    """Pallas-backed SoftExponential forward. Same shape/dtype as input.

    `alpha` must be a Python float (the module's scalar Parameter, concrete at
    forward time).
    """
    # TODO(synk): backward pass (grad wrt x and alpha) not implemented; forward only.
    alpha = float(alpha)
    if alpha == 0.0:
        return x  # identity branch of the module — no kernel needed.

    orig_shape = x.shape
    orig_dtype = x.dtype
    itemsize = jnp.dtype(orig_dtype).itemsize

    flat = x.reshape(-1)          # metadata-only for contiguous input
    n = flat.shape[0]
    n_main = (n // _LANE) * _LANE

    if n_main == 0:
        # Whole tensor is smaller than one lane row — not worth a kernel.
        return _soft_exp_jnp(flat, alpha).reshape(orig_shape)

    main = flat if n_main == n else flat[:n_main]
    x2d = main.reshape(-1, _LANE)
    rows = x2d.shape[0]

    # Sublane packing: f32 -> 8 rows/vreg, bf16/f16 -> 16, int8/fp8 -> 32.
    sub = {4: 8, 2: 16, 1: 32}.get(itemsize, 8)

    # ~2 MiB blocks; partial last block along the leading axis is masked by
    # Pallas.  If everything fits in one block, split into >=2 grid steps so
    # the parallel axis can be sharded across v7x's 2 TensorCores.
    max_rows = max(sub, (_TARGET_BLOCK_BYTES // (_LANE * itemsize)) // sub * sub)
    if rows > max_rows:
        block_rows = max_rows
    elif rows >= 2 * sub:
        half = _round_up(pl.cdiv(rows, 2), sub)
        block_rows = half if half < rows else rows
    else:
        block_rows = rows          # tiny: one full-extent block
    grid = (pl.cdiv(rows, block_rows),)

    # bf16 compute (transcendental) only for bf16 inputs on bf16-capable chips.
    compute_dtype = (jnp.bfloat16
                     if (orig_dtype == jnp.bfloat16 and _bf16_compute_ok())
                     else jnp.float32)

    body = _soft_exp_neg_kernel if alpha < 0.0 else _soft_exp_pos_kernel
    kernel = functools.partial(body, alpha=alpha, inv_alpha=1.0 / alpha,
                               compute_dtype=compute_dtype)

    cost = pl.CostEstimate(flops=4 * n_main,
                           transcendentals=n_main,
                           bytes_accessed=2 * n_main * itemsize)

    out2d = pl.pallas_call(
        kernel,
        out_shape=jax.ShapeDtypeStruct(x2d.shape, orig_dtype),
        grid=grid,
        in_specs=[pl.BlockSpec((block_rows, _LANE), lambda i: (i, 0))],
        out_specs=pl.BlockSpec((block_rows, _LANE), lambda i: (i, 0)),
        compiler_params=pltpu.CompilerParams(
            dimension_semantics=("parallel",)),
        cost_estimate=cost,
        # input_output_aliases={0: 0} would save the output HBM allocation,
        # but requires the caller to donate x; left off for safety.
    )(x2d)

    out_flat = out2d.reshape(-1)
    if n_main != n:
        tail = _soft_exp_jnp(flat[n_main:], alpha)
        out_flat = jnp.concatenate([out_flat, tail])
    return out_flat.reshape(orig_shape)


# ---------------------------------------------------------------------------
# Reference + self-test
# ---------------------------------------------------------------------------
def _reference(x, alpha):
    """Pure-JAX f32 reference mirroring the PyTorch forward."""
    xf = x.astype(jnp.float32)
    if alpha == 0.0:
        ref = xf
    elif alpha < 0.0:
        ref = -jnp.log(1.0 - alpha * (xf + alpha)) / alpha
    else:
        ref = (jnp.exp(alpha * xf) - 1.0) / alpha + alpha
    return ref.astype(x.dtype)


if __name__ == "__main__":
    key = jax.random.PRNGKey(0)

    # NCHW activation map (2048 elems -> 16 rows of 128; split into 2 blocks
    # to exercise the megacore-split path).
    x = jax.random.normal(key, (2, 4, 16, 16), dtype=jnp.float32)

    # NOTE: for alpha < 0 the module itself produces NaN when
    # 1 - alpha*(x + alpha) <= 0; the kernel reproduces that exactly, so
    # compare with equal_nan=True.
    for alpha in (0.5, -0.5, 0.0):
        y = soft_exponential(x, alpha)
        jax.block_until_ready(y)
        y_ref = _reference(x, alpha)
        assert y.shape == x.shape and y.dtype == x.dtype
        assert jnp.allclose(y, y_ref, atol=1e-5, rtol=1e-5, equal_nan=True), \
            f"mismatch at alpha={alpha}"

    # Medium 2D input (512 rows -> 2 blocks of 256 rows).
    x_med = jax.random.normal(jax.random.PRNGKey(2), (64, 1024),
                              dtype=jnp.float32)
    for alpha in (1.0, -0.25):
        y = soft_exponential(x_med, alpha)
        jax.block_until_ready(y)
        y_ref = _reference(x_med, alpha)
        assert jnp.allclose(y, y_ref, atol=1e-5, rtol=1e-5, equal_nan=True), \
            f"mismatch at alpha={alpha} (medium)"

    # Ragged sizes: aligned prefix through the kernel + jnp tail.
    x_rag = jax.random.normal(jax.random.PRNGKey(1), (3, 5, 100),
                              dtype=jnp.float32)   # 1500 = 11*128 + 92
    x_tiny = jax.random.normal(jax.random.PRNGKey(3), (3, 5, 7),
                               dtype=jnp.float32)  # 105 < 128: jnp-only path
    for xr in (x_rag, x_tiny):
        for alpha in (0.5, -0.25):
            y = soft_exponential(xr, alpha)
            jax.block_until_ready(y)
            y_ref = _reference(xr, alpha)
            assert y.shape == xr.shape and y.dtype == xr.dtype
            assert jnp.allclose(y, y_ref, atol=1e-5, rtol=1e-5,
                                equal_nan=True), \
                f"mismatch at alpha={alpha} (ragged {xr.shape})"

    # bf16 input (positive branch only; generous tolerance covers bf16
    # rounding / cancellation whether the compute path is bf16 or f32).
    x_bf = jax.random.normal(jax.random.PRNGKey(4), (2, 4, 16, 16),
                             dtype=jnp.bfloat16)
    y = soft_exponential(x_bf, 0.5)
    jax.block_until_ready(y)
    y_ref = _reference(x_bf, 0.5)
    assert y.shape == x_bf.shape and y.dtype == x_bf.dtype
    assert jnp.allclose(y.astype(jnp.float32), y_ref.astype(jnp.float32),
                        atol=5e-2, rtol=5e-2), "mismatch at alpha=0.5 (bf16)"

    print("KERNEL_OK")
</pallas_src>

<mosaic_0001>
module attributes {stable_mosaic.version = 11 : i64} {
  func.func @_soft_exp_pos_kernel(%arg0: i32, %arg1: memref<8x128xf32, #tpu.memory_space<vmem>>, %arg2: memref<8x128xf32, #tpu.memory_space<vmem>>) attributes {dimension_semantics = [#tpu.dimension_semantics<parallel>], iteration_bounds = array<i64: 2>, scalar_prefetch = 0 : i64, scratch_operands = 0 : i64, tpu.core_type = #tpu.core_type<tc>, window_params = [{transform_indices = @transform_0, window_bounds = array<i64: 8, 128>}, {transform_indices = @transform_1, window_bounds = array<i64: 8, 128>}]} {
    %c0 = arith.constant 0 : index
    %c0_0 = arith.constant 0 : index
    %0 = vector.load %arg1[%c0, %c0_0] : memref<8x128xf32, #tpu.memory_space<vmem>>, vector<8x128xf32>
    %cst = arith.constant 5.000000e-01 : f32
    %1 = vector.broadcast %cst : f32 to vector<8x128xf32>
    %2 = arith.mulf %0, %1 : vector<8x128xf32>
    %3 = math.exp %2 : vector<8x128xf32>
    %cst_1 = arith.constant 1.000000e+00 : f32
    %4 = vector.broadcast %cst_1 : f32 to vector<8x128xf32>
    %5 = arith.subf %3, %4 : vector<8x128xf32>
    %cst_2 = arith.constant 2.000000e+00 : f32
    %6 = vector.broadcast %cst_2 : f32 to vector<8x128xf32>
    %7 = arith.mulf %5, %6 : vector<8x128xf32>
    %cst_3 = arith.constant 5.000000e-01 : f32
    %8 = vector.broadcast %cst_3 : f32 to vector<8x128xf32>
    %9 = arith.addf %7, %8 : vector<8x128xf32>
    %c0_4 = arith.constant 0 : index
    %c0_5 = arith.constant 0 : index
    %10 = vector.load %arg2[%c0_4, %c0_5] : memref<8x128xf32, #tpu.memory_space<vmem>>, vector<8x128xf32>
    tpu.vector_store %arg2[%c0_4, %c0_5], %9 {strides = array<i32>} : memref<8x128xf32, #tpu.memory_space<vmem>>, vector<8x128xf32>,
    return
  }
  func.func @transform_0(%arg0: i32) -> (i32, i32) {
    %c0_i32 = arith.constant 0 : i32
    %c0_i32_0 = arith.constant 0 : i32
    return %arg0, %c0_i32 : i32, i32
  }
  func.func @transform_1(%arg0: i32) -> (i32, i32) {
    %c0_i32 = arith.constant 0 : i32
    %c0_i32_0 = arith.constant 0 : i32
    return %arg0, %c0_i32 : i32, i32
  }
}

</mosaic_0001>

<bundles_post_ra>
// kernel: tpu_custom_call.1
= control target key start
LH: loop header
LB: loop body
LE: loop exit
PB: predicated region body
PF: predicated region fallthrough
CT: control target
= control target key end

     0   :  { %6 = vsyncpa [#allocation3], 0  ;;  %s532_s0 = inlined_call_operand.hbm [shape: f32[16,128], index: 0, kind: input, shape index: {}]   ;;  %s533_s1 = inlined_call_operand.hbm [shape: f32[16,128], index: 1, kind: output, shape index: {}]  }
   0x1   :  { %8 = vsyncpa [#allocation3 + $0x1], 0 }
   0x2   :  { %9 = vsyncpa [#allocation4], 0 }
   0x3   :  { %11 = vsyncpa [#allocation4 + $0x1], 0  ;;  %s391_s6 = smov 0   ;;  %s393_s7 = smov 0  }
   0x4   :  { %s395_s8 = smov 0   ;;  %s397_s9 = smov 0  }
   0x5 LB: > { %s412_s10 = sadd.s32 4294967295, %s377_s9   ;;  %s224_s11 = sadd.s32 4294967294, %s377_s9   ;;  %s377_s9 = sphi %s397_s9, %s550_s9   ;;  %s373_s8 = sphi %s395_s8, %s549_s8   ;;  %s369_s7 = sphi %s393_s7, %s548_s7   ;;  %s365_s6 = sphi %s391_s6, %s547_s6  }
   0x6   : > { %s416_s12 = sadd.s32 1, %s377_s9   ;;  %s24_s13 = sadd.s32 1, %s373_s8 }
   0x7   : > { %s21_s14 = ssub.s32 %s377_s9, %s416_s12  ;;  %p31_p0 = scmp.ne.s32.totalorder %s373_s8, %s369_s7 }
   0x8   : > { %p22_p1 = scmp.eq.s32.totalorder %s21_s14, 0  ;;  %p32_p2 = scmp.eq.s32.totalorder %s377_s9, 0 }
   0x9   : > { %p37_p3 = scmp.ne.s32.totalorder %s369_s7, %s365_s6  ;;  %p38_p4 = scmp.eq.s32.totalorder %s412_s10, 0 }
   0xa   : > { %s428_s15 = scalar_select %p22_p1, %s373_s8, %s24_s13  }
   0xb   : > { %p430_p5 = por %p32_p2, %p31_p0  ;;  %p434_p6 = por %p38_p4, %p37_p3 }
   0xc   : > { %p61_p7 = scmp.eq.s32.totalorder %s412_s10, 1  ;;  %p67_p8 = scmp.eq.s32.totalorder %s224_s11, 1 }
   0xd   : > { %s537_s17 = scalar_select %p434_p6, 1, 0 }
   0xe   : > { %p249_p10 = scmp.lt.s32.totalorder %s377_s9, 2  ;;  %p441_p11 = por %p61_p7, %p31_p0 }
   0xf   : > { %p445_p12 = por %p67_p8, %p37_p3  ;;  %s87_s20 = sand.u32 1, %s373_s8  }
  0x10   : > { %s538_s18 = scalar_select %p441_p11, 1, 0 }
  0x11   : > { %s539_s19 = scalar_select %p445_p12, 1, 0 }
  0x12   : > { %s228_s21 = sshll.u32 %s377_s9, 7  ;;  %s227_s22 = sshll.u32 %s87_s20, 3 }
  0x13   : > { %s454_s25 = scalar_lea.hbm %s532_s0, %s228_s21  ;;  %s91_s26 = scalar_lea.vmem [#allocation2], %s227_s22 }
  0x14   : > { %s98_s27 = sshll.u32 %s91_s26, 4  ;;  %p458_p13 = pnand %p249_p10, %p430_p5  ;;  %s462_s27 = int_to_ptr.vmem [resolvable:$true] %s98_s27 }
  0x15   : > { %s88_s29 = scalar_lea.sflag [#allocation3], %s87_s20  ;;  %s285_s30 = scalar_lea.hbm %s454_s25, 128 }
  0x16   : > { %p286_p2 = scmp.ne.s32.totalorder %s454_s25, %s285_s30  ;;  %p287_p3 = pneg %p458_p13 }
  0x17   : > { %s290_s4 = scalar_lea.hbm %s532_s0, 256  ;;  %p291_p5 = scmp.lt.s32.totalorder %s454_s25, %s532_s0 }
  0x18   : > { %p288_p4 = pnand %p287_p3, %p286_p2  ;;  %p292_p8 = scmp.lt.s32.totalorder %s290_s4, %s285_s30 }
  0x1a   : > { %p289_p7 = pneg %p288_p4  ;;  %p293_p10 = por %p292_p8, %p291_p5 }
  0x1c   : > { %p294_p9 = pnand %p293_p10, %p289_p7 }
  0x1e   : > { %297 = shalt.err (!%p294_p9)
}
  0x1f   : > { %s298_s13 = scalar_lea.vmem %s462_s27, 128  ;;  %s379_s14 = smov [#allocation2]  }
  0x20   : > { %p299_p0 = scmp.ne.s32.totalorder %s462_s27, %s298_s13  ;;  %s303_s16 = sshll.u32 %s379_s14, 4  ;;  %s304_s16 = int_to_ptr.vmem [resolvable:$false] %s303_s16 }
  0x21   : > { %s305_s20 = scalar_lea.vmem %s304_s16, 256  ;;  %p306_p4 = scmp.lt.s32.totalorder %s462_s27, %s304_s16 }
  0x22   : > { %p301_p1 = pnand %p299_p0, %p287_p3  ;;  %p307_p12 = scmp.lt.s32.totalorder %s305_s20, %s298_s13 }
  0x24   : > { %p302_p2 = pneg %p301_p1  ;;  %p308_p11 = por %p307_p12, %p306_p4 }
  0x26   : > { %p309_p6 = pnand %p308_p11, %p302_p2 }
  0x28   : > { %312 = shalt.err (!%p309_p6)
}
  0x29   : > { %244 = dma.hbm_to_vmem [thread:$0]  (!%p458_p13), %s454_s25, 128, %s462_s27, %s88_s29  }
  0x2a   : > { %p541_p9 = scmp.lt.s32.totalorder %s377_s9, 3  ;;  %p542_p7 = scmp.ge.s32.totalorder %s377_s9, 1 }
  0x2c   : > { %p104_p0 = pnand %p542_p7, %p541_p9 }
  0x2d   : > { %s489_s21 = sand.u32 (!%p104_p0), 1, %s369_s7   ;;  %p543_p6 = scmp.ne.s32.totalorder (!%p104_p0), %s537_s17, 0 }
  0x2e   : > { %107 = sbr.rel (%p104_p0) target bundleno = 90 (0x5a), region = 24  ;;  %s230_s22 = sshll.u32 (!%p104_p0), %s489_s21, 3 }
  0x2f   : > { %s110_s23 = scalar_lea.sflag (!%p104_p0), [#allocation3], %s489_s21  ;;  %s113_s24 = scalar_lea.vmem (!%p104_p0), [#allocation2], %s230_s22 }
  0x33   : > { %356 = dma.done.wait (%p543_p6), %s110_s23, 128  }
  0x34   : > { %358 = vsyncadd (%p543_p6), %s110_s23, 4294967168  ;;  %v132_v0 = vld [vmem:[%s113_s24] sm:$0xff]  ;;  %s131_s25 = scalar_lea.vmem [#allocation5], %s230_s22  ;;  %s234_s27 = sshll.u32 %s412_s10, 7 }
  0x35   : > { %v133_v1 = vmul.f32 0.5, %v132_v0  ;;  %s154_s26 = sshll.u32 %s131_s25, 4  ;;  %s152_s17 = scalar_lea.hbm %s533_s1, %s234_s27  ;;  %s155_s26 = int_to_ptr.vmem [resolvable:$true] %s154_s26 }
  0x36   : > { %s141_s30 = scalar_lea.sflag [#allocation4], %s489_s21  ;;  %s313_s2 = scalar_lea.vmem %s155_s26, 128 }
  0x37   : > { %v134_v2 = vmul.f32 1.442695, %v133_v1  ;;  %p314_p11 = scmp.ne.s32.totalorder %s155_s26, %s313_s2  ;;  %p544_p12 = scmp.ne.s32.totalorder %s538_s18, 0 }
  0x38   : > { %s380_s3 = smov [#allocation5]  }
  0x39   : > { %283 = vpow2.f32 %v134_v2  ;;  %p315_p13 = pnand %p314_p11, %p544_p12  ;;  %s317_s4 = sshll.u32 %s380_s3, 4  ;;  %s318_s4 = int_to_ptr.vmem [resolvable:$false] %s317_s4 }
  0x3a   : > { %s319_s5 = scalar_lea.vmem %s318_s4, 256  ;;  %p320_p3 = scmp.lt.s32.totalorder %s155_s26, %s318_s4 }
  0x3b   : > { %p316_p1 = pneg %p315_p13  ;;  %p321_p5 = scmp.lt.s32.totalorder %s319_s5, %s313_s2 }
  0x3d   : > { %p322_p8 = por %p321_p5, %p320_p3 }
  0x3f   : > { %p323_p10 = pnand %p322_p8, %p316_p1 }
  0x46   : > { %v284_v3 = vpop.eup %283 }
  0x47   : > { %v232_v4 = vadd.f32 -1.0, %v284_v3 }
  0x49   : > { %v137_v5 = vmul.f32 2.0, %v232_v4 }
  0x4b   : > { %v138_v6 = vadd.f32 0.5, %v137_v5 }
  0x4d   : > { %139 = vst [vmem:[%s131_s25] sm:$0xff] %v138_v6 }
  0x4e   : > { %326 = shalt.err (!%p323_p10)
}
  0x4f   : > { %s327_s10 = scalar_lea.hbm %s152_s17, 128  ;;  %s331_s14 = scalar_lea.hbm %s533_s1, 256 }
  0x50   : > { %p328_p2 = scmp.ne.s32.totalorder %s152_s17, %s327_s10  ;;  %p332_p7 = scmp.lt.s32.totalorder %s152_s17, %s533_s1 }
  0x51   : > { %p333_p0 = scmp.lt.s32.totalorder %s331_s14, %s327_s10 }
  0x52   : > { %p329_p4 = pnand %p328_p2, %p544_p12 }
  0x53   : > { %p334_p6 = por %p333_p0, %p332_p7 }
  0x54   : > { %p330_p9 = pneg %p329_p4 }
  0x56   : > { %p335_p11 = pnand %p334_p6, %p330_p9 }
  0x58   : > { %338 = shalt.err (!%p335_p11)
}
  0x59   : > { %239 = dma.vmem_to_hbm [thread:$0]  (%p544_p12), %s155_s26, 128, %s152_s17, %s141_s30  }
  0x5a PF: > { %s166_s21 = sand.u32 1, %s365_s6   ;;  %p545_p13 = scmp.ne.s32.totalorder %s539_s19, 0 }
  0x5b   : > { %p546_p1 = scmp.ge.s32.totalorder %s377_s9, 2  ;;  %s167_s22 = scalar_lea.sflag [#allocation4], %s166_s21 }
  0x5d   : > { %p246_p3 = pnand %p546_p1, %p545_p13 }
  0x5f   : > { %p247_p5 = pneg %p246_p3 }
  0x61   : > { %360 = dma.done.wait (%p247_p5), %s167_s22, 128  }
  0x62   : > { %362 = vsyncadd (%p247_p5), %s167_s22, 4294967168  ;;  %p14_p8 = scmp.ge.s32.totalorder %s416_s12, 4   ;;  %s547_s6 = smov %s369_s7 }
  0x63   : > { %s548_s7 = smov %s373_s8  ;;  %s549_s8 = smov %s428_s15 }
  0x64   : > { %s550_s9 = smov %s416_s12  ;;  %16 = sbr.rel (!%p14_p8) target bundleno = 5 (0x5), region = 69 }
  0x69   :  { %172 = vsyncpa [#allocation3], 1 }
  0x6a   :  { %174 = vsyncpa [#allocation3 + $0x1], 1 }
  0x6b   :  { %175 = vsyncpa [#allocation4], 1 }
  0x6c   :  { %177 = vsyncpa [#allocation4 + $0x1], 1 }

</bundles_post_ra>
